<compile_context>
chip_gen: v5e
topology: v5e:2x2
jax: 0.10.0
libtpu: 0.0.40
codegen_flags: <defaults>
</compile_context>

<pallas_src>
import functools

import jax
import jax.numpy as jnp
from jax import lax
from jax.experimental import pallas as pl
from jax.experimental.pallas import tpu as pltpu

_INV_SQRT2 = 0.7071067811865475  # hoisted 1/sqrt(2) for exact GELU


def _mlp_kernel(x_ref, w1_ref, b1_ref, w2_ref, b2_ref, o_ref):
    # x_ref : (Cin,  ts)   w1_ref: (Ch,  Cin)   b1_ref: (Ch,  1)
    # w2_ref: (Cout, Ch)   b2_ref: (Cout, 1)    o_ref : (Cout, ts)
    x = x_ref[...]

    # fc1: 1x1 conv (+ folded BN) -> exact GELU (erf-based, matches nn.GELU default)
    h = jnp.dot(w1_ref[...], x, preferred_element_type=jnp.float32) + b1_ref[...]
    h = 0.5 * h * (1.0 + lax.erf(h * _INV_SQRT2))

    # fc2: 1x1 conv (+ folded BN), no activation
    y = jnp.dot(w2_ref[...], h.astype(w2_ref.dtype),
                preferred_element_type=jnp.float32) + b2_ref[...]
    o_ref[...] = y.astype(o_ref.dtype)


@functools.partial(jax.jit, static_argnames=("tile_s",))
def mlp_pallas(x_nchw, w1t, b1, w2t, b2, *, tile_s=512):
    """x_nchw: (N, Cin, H, W).
       w1t: (Ch, Cin), b1: (Ch, 1), w2t: (Cout, Ch), b2: (Cout, 1)  (BN already folded)."""
    N, Cin, H, W = x_nchw.shape
    Ch = w1t.shape[0]
    Cout = w2t.shape[0]
    S = H * W

    # Spatial tile: lane-dense (multiple of 128), never larger than the (128-aligned)
    # spatial extent so small inputs don't force padding.
    S_128 = pl.cdiv(S, 128) * 128
    ts = min(tile_s, S_128)
    ts = max(128, (ts // 128) * 128)
    S_pad = pl.cdiv(S, ts) * ts

    # NCHW is contiguous as (N, Cin, H*W): this reshape is a free view, no HBM transpose.
    x3 = x_nchw.reshape(N, Cin, S)
    if S_pad != S:
        # Only when the spatial size does not divide the tile (padded cols sliced off below).
        x3 = jnp.pad(x3, ((0, 0), (0, 0), (0, S_pad - S)))

    # VMEM budget: double-buffered in/out tiles + weights/biases + f32 hidden tile,
    # with 2x headroom; clamp to [32 MiB, 48 MiB] (valid on v5e/v6e/v7x).
    act_item = jnp.dtype(x_nchw.dtype).itemsize
    w_item = jnp.dtype(w1t.dtype).itemsize
    est = (2 * (Cin + Cout) * ts * act_item
           + 2 * (Ch * Cin + Cout * Ch + Ch + Cout) * w_item
           + Ch * ts * 4)
    vmem_limit = int(min(max(2 * est, 32 * 1024 * 1024), 48 * 1024 * 1024))

    grid = (N, S_pad // ts)

    out3 = pl.pallas_call(
        _mlp_kernel,
        out_shape=jax.ShapeDtypeStruct((N, Cout, S_pad), x_nchw.dtype),
        grid_spec=pltpu.PrefetchScalarGridSpec(
            num_scalar_prefetch=0,
            grid=grid,
            in_specs=[
                # x: squeeze the batch dim, kernel sees (Cin, ts) — lane-dense last dim.
                pl.BlockSpec((None, Cin, ts), lambda n, s: (n, 0, s)),
                # Weights/biases: constant index_map -> Pallas keeps them resident (no re-DMA).
                pl.BlockSpec((Ch, Cin), lambda n, s: (0, 0)),
                pl.BlockSpec((Ch, 1), lambda n, s: (0, 0)),
                pl.BlockSpec((Cout, Ch), lambda n, s: (0, 0)),
                pl.BlockSpec((Cout, 1), lambda n, s: (0, 0)),
            ],
            # Output block (Cout, ts): last dim is a multiple of 128 -> unmasked stores.
            out_specs=pl.BlockSpec((None, Cout, ts), lambda n, s: (n, 0, s)),
        ),
        compiler_params=pltpu.CompilerParams(
            dimension_semantics=("parallel", "parallel"),
            vmem_limit_bytes=vmem_limit,
        ),
    )(x3, w1t, b1, w2t, b2)

    # (N, Cout, S) -> NCHW (free reshape; slice drops any spatial padding).
    return out3[:, :, :S].reshape(N, Cout, H, W)


def _trunc_normal(key, shape, std=0.02):
    # nn.init.trunc_normal_: truncated to [-2, 2] std devs, mean 0.
    return std * jax.random.truncated_normal(key, -2.0, 2.0, shape, jnp.float32)


def make_params(key, in_chans, hidden_chans, out_chans):
    """Deterministic parameter init mirroring MLP._init_weights + default BN stats.
    Returns channels-major (c_out, c_in) weights and (c_out, 1) biases with BN folded in."""
    k1, k2 = jax.random.split(key)
    eps = 1e-5

    # Conv2d weights: (out, in, 1, 1), trunc_normal std=0.02, bias=False in ultralytics Conv.
    conv1_w = _trunc_normal(k1, (hidden_chans, in_chans, 1, 1))
    conv2_w = _trunc_normal(k2, (out_chans, hidden_chans, 1, 1))

    def fold_bn(conv_w, c_out):
        # BatchNorm2d defaults: gamma=1, beta=0, running_mean=0, running_var=1 (eval mode).
        gamma = jnp.ones((c_out,), jnp.float32)
        beta = jnp.zeros((c_out,), jnp.float32)
        mean = jnp.zeros((c_out,), jnp.float32)
        var = jnp.ones((c_out,), jnp.float32)
        scale = gamma / jnp.sqrt(var + eps)                 # (c_out,)
        w = conv_w[:, :, 0, 0] * scale[:, None]             # (c_out, c_in) channels-major
        b = (beta - mean * scale)[:, None]                  # (c_out, 1) column bias
        return w, b

    w1t, b1 = fold_bn(conv1_w, hidden_chans)
    w2t, b2 = fold_bn(conv2_w, out_chans)
    return w1t, b1, w2t, b2


if __name__ == "__main__":
    # Small shapes: N=2, in_chans=4, H=W=16, hidden_chans=32, out_chans=4.
    N, Cin, H, W = 2, 4, 16, 16
    hidden, Cout = 32, 4

    key = jax.random.PRNGKey(0)
    kx, kp = jax.random.split(key)
    x = jax.random.normal(kx, (N, Cin, H, W), jnp.float32)

    w1t, b1, w2t, b2 = make_params(kp, Cin, hidden, Cout)

    out = mlp_pallas(x, w1t, b1, w2t, b2)
    out = jax.block_until_ready(out)

    # Reference check in plain JAX (same folded weights, exact GELU).
    x2d = jnp.transpose(x, (0, 2, 3, 1)).reshape(-1, Cin)
    h = x2d @ w1t.T + b1[:, 0]
    h = 0.5 * h * (1.0 + lax.erf(h * _INV_SQRT2))
    ref2d = h @ w2t.T + b2[:, 0]
    ref = jnp.transpose(ref2d.reshape(N, H, W, Cout), (0, 3, 1, 2))

    assert out.shape == (N, Cout, H, W)
    assert jnp.allclose(out, ref, atol=1e-5, rtol=1e-5)

    # TODO(synk): Dropout(drop_ratio) is identity here (eval / ratio=0.0); training-mode
    # dropout and training-mode BatchNorm batch statistics are not implemented. bf16 MXU
    # operands (v6e/v7x) are a further ~2x HBM win but drift past the 1e-5 fp32 tolerance.
    print("KERNEL_OK")
</pallas_src>

<mosaic_0001>
module attributes {stable_mosaic.version = 11 : i64} {
  func.func @_mlp_kernel(%arg0: i32, %arg1: i32, %arg2: memref<1x4x256xf32, #tpu.memory_space<vmem>>, %arg3: memref<32x4xf32, #tpu.memory_space<vmem>>, %arg4: memref<32x1xf32, #tpu.memory_space<vmem>>, %arg5: memref<4x32xf32, #tpu.memory_space<vmem>>, %arg6: memref<4x1xf32, #tpu.memory_space<vmem>>, %arg7: memref<1x4x256xf32, #tpu.memory_space<vmem>>) attributes {dimension_semantics = [#tpu.dimension_semantics<parallel>, #tpu.dimension_semantics<parallel>], iteration_bounds = array<i64: 2, 1>, scalar_prefetch = 0 : i64, scratch_operands = 0 : i64, tpu.core_type = #tpu.core_type<tc>, window_params = [{transform_indices = @transform_0, window_bounds = array<i64: 1, 4, 256>}, {pipeline_mode = #tpu.pipeline_mode<synchronous>, transform_indices = @transform_1, window_bounds = array<i64: 32, 4>}, {pipeline_mode = #tpu.pipeline_mode<synchronous>, transform_indices = @transform_2, window_bounds = array<i64: 32, 1>}, {pipeline_mode = #tpu.pipeline_mode<synchronous>, transform_indices = @transform_3, window_bounds = array<i64: 4, 32>}, {pipeline_mode = #tpu.pipeline_mode<synchronous>, transform_indices = @transform_4, window_bounds = array<i64: 4, 1>}, {transform_indices = @transform_5, window_bounds = array<i64: 1, 4, 256>}]} {
    %c0 = arith.constant 0 : index
    %c0_0 = arith.constant 0 : index
    %c0_1 = arith.constant 0 : index
    %0 = vector.load %arg2[%c0, %c0_0, %c0_1] : memref<1x4x256xf32, #tpu.memory_space<vmem>>, vector<1x4x256xf32>
    %1 = vector.shape_cast %0 : vector<1x4x256xf32> to vector<4x256xf32>
    %c0_2 = arith.constant 0 : index
    %c0_3 = arith.constant 0 : index
    %2 = vector.load %arg3[%c0_2, %c0_3] : memref<32x4xf32, #tpu.memory_space<vmem>>, vector<32x4xf32>
    %cst = arith.constant dense<0.000000e+00> : vector<32x256xf32>
    %3 = tpu.matmul %2, %1, %cst {dimension_numbers = #tpu.dot_dimension_numbers<[1], [0], [0], [1], [0, 0, 1, 1], [], []>} : vector<32x4xf32>, vector<4x256xf32>, vector<32x256xf32> -> vector<32x256xf32>
    %c0_4 = arith.constant 0 : index
    %c0_5 = arith.constant 0 : index
    %4 = vector.load %arg4[%c0_4, %c0_5] : memref<32x1xf32, #tpu.memory_space<vmem>>, vector<32x1xf32>
    %5 = vector.broadcast %4 : vector<32x1xf32> to vector<32x256xf32>
    %6 = arith.addf %3, %5 : vector<32x256xf32>
    %cst_6 = arith.constant 5.000000e-01 : f32
    %7 = vector.broadcast %cst_6 : f32 to vector<32x256xf32>
    %8 = arith.mulf %7, %6 : vector<32x256xf32>
    %cst_7 = arith.constant 0.707106769 : f32
    %9 = vector.broadcast %cst_7 : f32 to vector<32x256xf32>
    %10 = arith.mulf %6, %9 : vector<32x256xf32>
    %11 = math.erf %10 : vector<32x256xf32>
    %cst_8 = arith.constant 1.000000e+00 : f32
    %12 = vector.broadcast %cst_8 : f32 to vector<32x256xf32>
    %13 = arith.addf %12, %11 : vector<32x256xf32>
    %14 = arith.mulf %8, %13 : vector<32x256xf32>
    %c0_9 = arith.constant 0 : index
    %c0_10 = arith.constant 0 : index
    %15 = vector.load %arg5[%c0_9, %c0_10] : memref<4x32xf32, #tpu.memory_space<vmem>>, vector<4x32xf32>
    %cst_11 = arith.constant dense<0.000000e+00> : vector<4x256xf32>
    %16 = tpu.matmul %15, %14, %cst_11 {dimension_numbers = #tpu.dot_dimension_numbers<[1], [0], [0], [1], [0, 0, 1, 1], [], []>} : vector<4x32xf32>, vector<32x256xf32>, vector<4x256xf32> -> vector<4x256xf32>
    %c0_12 = arith.constant 0 : index
    %c0_13 = arith.constant 0 : index
    %17 = vector.load %arg6[%c0_12, %c0_13] : memref<4x1xf32, #tpu.memory_space<vmem>>, vector<4x1xf32>
    %18 = vector.broadcast %17 : vector<4x1xf32> to vector<4x256xf32>
    %19 = arith.addf %16, %18 : vector<4x256xf32>
    %c0_14 = arith.constant 0 : index
    %c0_15 = arith.constant 0 : index
    %c0_16 = arith.constant 0 : index
    %20 = vector.load %arg7[%c0_14, %c0_15, %c0_16] : memref<1x4x256xf32, #tpu.memory_space<vmem>>, vector<1x4x256xf32>
    %21 = vector.shape_cast %20 : vector<1x4x256xf32> to vector<4x256xf32>
    %22 = vector.shape_cast %19 : vector<4x256xf32> to vector<1x4x256xf32>
    tpu.vector_store %arg7[%c0_14, %c0_15, %c0_16], %22 {strides = array<i32>} : memref<1x4x256xf32, #tpu.memory_space<vmem>>, vector<1x4x256xf32>,
    return
  }
  func.func @transform_0(%arg0: i32, %arg1: i32) -> (i32, i32, i32) {
    %c0_i32 = arith.constant 0 : i32
    %c0_i32_0 = arith.constant 0 : i32
    return %arg0, %c0_i32, %arg1 : i32, i32, i32
  }
  func.func @transform_1(%arg0: i32, %arg1: i32) -> (i32, i32) {
    %c0_i32 = arith.constant 0 : i32
    %c0_i32_0 = arith.constant 0 : i32
    %c0_i32_1 = arith.constant 0 : i32
    return %c0_i32, %c0_i32_0 : i32, i32
  }
  func.func @transform_2(%arg0: i32, %arg1: i32) -> (i32, i32) {
    %c0_i32 = arith.constant 0 : i32
    %c0_i32_0 = arith.constant 0 : i32
    %c0_i32_1 = arith.constant 0 : i32
    return %c0_i32, %c0_i32_0 : i32, i32
  }
  func.func @transform_3(%arg0: i32, %arg1: i32) -> (i32, i32) {
    %c0_i32 = arith.constant 0 : i32
    %c0_i32_0 = arith.constant 0 : i32
    %c0_i32_1 = arith.constant 0 : i32
    return %c0_i32, %c0_i32_0 : i32, i32
  }
  func.func @transform_4(%arg0: i32, %arg1: i32) -> (i32, i32) {
    %c0_i32 = arith.constant 0 : i32
    %c0_i32_0 = arith.constant 0 : i32
    %c0_i32_1 = arith.constant 0 : i32
    return %c0_i32, %c0_i32_0 : i32, i32
  }
  func.func @transform_5(%arg0: i32, %arg1: i32) -> (i32, i32, i32) {
    %c0_i32 = arith.constant 0 : i32
    %c0_i32_0 = arith.constant 0 : i32
    return %arg0, %c0_i32, %arg1 : i32, i32, i32
  }
}

</mosaic_0001>

<bundles_post_ra>
// kernel: mlp_pallas.1
= control target key start
LH: loop header
LB: loop body
LE: loop exit
PB: predicated region body
PF: predicated region fallthrough
CT: control target
= control target key end

     0   :  { %s1003_s18 = smov 0   ;;  %s1005_s19 = smov 0   ;;  %s1379_s0 = inlined_call_operand.vmem [shape: f32[2,4,256], index: 0, kind: input, shape index: {}]   ;;  %s1380_s1 = inlined_call_operand.vmem [shape: f32[32,4], index: 1, kind: input, shape index: {}]   ;;  %s1381_s2 = inlined_call_operand.vmem [shape: f32[32,1], index: 2, kind: input, shape index: {}]   ;;  %s1382_s3 = inlined_call_operand.vmem [shape: f32[4,32], index: 3, kind: input, shape index: {}]   ;;  %s1383_s4 = inlined_call_operand.vmem [shape: f32[4,1], index: 4, kind: input, shape index: {}]   ;;  %s1384_s5 = inlined_call_operand.vmem [shape: f32[2,4,256], index: 5, kind: output, shape index: {}]  }
   0x1   :  { %s1007_s20 = smov 0  }
   0x2 LB: > { %s27_s21 = sadd.s32 1, %s966_s19  ;;  %p873_p0 = scmp.ge.s32.totalorder %s970_s20, 1  ;;  %s970_s20 = sphi %s1007_s20, %s15_s20   ;;  %s966_s19 = sphi %s1005_s19, %s1396_s19   ;;  %s962_s18 = sphi %s1003_s18, %s1395_s18  }
   0x3   : > { %p29_p1 = scmp.ge.s32.totalorder %s27_s21, 2  ;;  %p208_p2 = scmp.lt.s32.totalorder %s970_s20, 3 }
   0x5   : > { %s1398_s21 = smov (%p29_p1, %s27_s21), 0  ;;  %p209_p3 = pnand %p873_p0, %p208_p2 }
   0x6   : > { %p245_p4 = scmp.lt.s32.totalorder (!%p209_p3), %s962_s18, 1 }
   0x7   : > { %212 = sbr.rel (%p209_p3) target bundleno = 403 (0x193), region = 40 }
   0xc   : > { %v972_v0 = vmov 0   ;;  %v270_v1 = vld [vmem:[%s1381_s2 + $0x8] sm:$0xff]  ;;  %v272_v2 = vld [vmem:[%s1381_s2 + $0x18] sm:$0xff]  ;;  %s1400_s18 = smov (!%p245_p4, %s962_s18), 1  ;;  %v269_v4 = vld [vmem:[%s1381_s2] sm:$0xff]  ;;  %vm310_vm0 = vcmask 1043456  }
   0xd   : > { %930 = vset.pattern.permute.xlu1 %v972_v0  ;;  %929 = vset.pattern.permute.xlu0 %v972_v0  ;;  %s900_s26 = sshll.u32 %s1400_s18, 3  ;;  %v271_v5 = vld [vmem:[%s1381_s2 + $0x10] sm:$0xff]  ;;  %v265_v6 = vld [vmem:[%s1380_s1] sm:$0xff]  ;;  %vm297_vm1 = vcmask 31744   ;;  %v268_v7 = vld [vmem:[%s1380_s1 + $0x18] sm:$0xff] }
   0xe   : > { %280 = vperm.xlu1 %930, %v270_v1   ;;  %290 = vperm.xlu0 %929, %v272_v2   ;;  %s252_s29 = scalar_lea.vmem %s1379_s0, %s900_s26  ;;  %v266_v10 = vld [vmem:[%s1380_s1 + $0x8] sm:$0xff]  ;;  %v267_v11 = vld [vmem:[%s1380_s1 + $0x10] sm:$0xff]  ;;  %s262_s28 = scalar_lea.vmem %s1384_s5, %s900_s26 }
   0xf   : > { %931 = vset.pattern.permute.xlu2 %v972_v0  ;;  %v264_v3 = vld [vmem:[%s252_s29] sm:$0xff] }
  0x10   : > { %294 = vst [vmem:[#allocation1] ss:$2 sm:$0xff] %v264_v3 }
  0x16   : > { %275 = vperm.xlu1 %930, %v269_v4   ;;  %285 = vperm.xlu0 %929, %v271_v5  }
  0x17   : > { %v295_v8 = vld.sshfl [vmem:[#allocation1] sm:$0xff pattern:$0x75316420]  ;;  %v296_v9 = vld.sshfl [vmem:[#allocation1 + $0x8] sm:$0xff pattern:$0x75316420] }
  0x18   : > { %878 = vmatpush.msk.msra.mxu0 %vm310_vm0, %v295_v8  ;;  %902 = vmatpush.msk.msra.mxu2 %vm310_vm0, %v295_v8 }
  0x19   : > { %883 = vmatpush.msk.msra.mxu1 %vm310_vm0, %v296_v9  ;;  %903 = vmatpush.msk.msra.mxu3 %vm310_vm0, %v296_v9 }
  0x1a   : > { %879 = vmatmul.msk.f32.vlgmr.msra.gmra.mxu0 %vm297_vm1, %v265_v6  ;;  %882 = vmatmul.msk.f32.vlgmr.msra.gmra.mxu2 %vm297_vm1, %v268_v7 }
  0x1b   : > { %884 = vmatmul.msk.f32.vlgmr.msra.gmra.mxu1 %vm297_vm1, %v265_v6  ;;  %887 = vmatmul.msk.f32.vlgmr.msra.gmra.mxu3 %vm297_vm1, %v268_v7 }
  0x22   : > { %880 = vmatmul.msk.f32.gmra.mxu0 %vm297_vm1, %v266_v10 }
  0x23   : > { %885 = vmatmul.msk.f32.gmra.mxu1 %vm297_vm1, %v266_v10 }
  0x2a   : > { %881 = vmatmul.msk.f32.gmra.mxu0 %vm297_vm1, %v267_v11 }
  0x2b   : > { %886 = vmatmul.msk.f32.gmra.mxu1 %vm297_vm1, %v267_v11 }
  0x80   : > { %v281_v12 = vpop.permute.xlu1 %280  ;;  %v291_v18 = vpop.permute.xlu0 %290 }
  0x88   : > { %v276_v13 = vpop.permute.xlu1 %275  ;;  %v286_v46 = vpop.permute.xlu0 %285 }
  0x97   : > { %v332_v14 = vpop.f32.mrf.mxu0 }
  0x98   : > { %v1065_v15 = vadd.f32 %v332_v14, %v276_v13  ;;  %v361_v16 = vpop.f32.mrf.mxu1 }
  0x99   : > { %v1070_v19 = vadd.f32 %v361_v16, %v276_v13 }
  0x9a   : > { %v1068_v17 = vmul.f32 0.70710677, %v1065_v15 }
  0x9b   : > { %v1084_v29 = vmul.f32 0.70710677, %v1070_v19 }
  0x9c   : > { %v389_v21 = vmul.f32 %v1068_v17, %v1068_v17 }
  0x9d   : > { %v341_v20 = vpop.f32.mrf.mxu2  ;;  %v429_v39 = vmul.f32 %v1084_v29, %v1084_v29 }
  0x9e   : > { %v1074_v22 = vadd.f32 %v341_v20, %v291_v18  ;;  %v370_v23 = vpop.f32.mrf.mxu3  ;;  %v1091_v32 = vmin.f32 %v389_v21, 16.0 }
  0x9f   : > { %v1076_v24 = vadd.f32 %v370_v23, %v291_v18  ;;  %v335_v25 = vpop.f32.mrf.mxu0  ;;  %v1121_v53 = vmin.f32 %v429_v39, 16.0 }
  0xa0   : > { %v1079_v26 = vmul.f32 0.70710677, %v1074_v22  ;;  %v1081_v27 = vadd.f32 %v335_v25, %v281_v12  ;;  %v364_v28 = vpop.f32.mrf.mxu1  ;;  %v391_v42 = vmul.f32 2.1237322e-06, %v1091_v32 }
  0xa1   : > { %v1087_v30 = vmul.f32 0.70710677, %v1076_v24  ;;  %v1089_v31 = vadd.f32 %v364_v28, %v281_v12  ;;  %v431_v1 = vmul.f32 2.1237322e-06, %v1121_v53 }
  0xa2   : > { %v629_v33 = vmul.f32 %v1079_v26, %v1079_v26  ;;  %v1096_v34 = vmul.f32 0.70710677, %v1081_v27  ;;  %v392_v56 = vadd.f32 0.00028619796, %v391_v42 }
  0xa3   : > { %v669_v35 = vmul.f32 %v1087_v30, %v1087_v30  ;;  %v1101_v36 = vmul.f32 0.70710677, %v1089_v31  ;;  %v432_v16 = vadd.f32 0.00028619796, %v431_v1 }
  0xa4   : > { %v1103_v37 = vmin.f32 %v629_v33, 16.0  ;;  %v469_v38 = vmul.f32 %v1096_v34, %v1096_v34  ;;  %v393_v5 = vmul.f32 %v392_v56, %v1091_v32 }
  0xa5   : > { %v1109_v40 = vmin.f32 %v669_v35, 16.0  ;;  %v509_v41 = vmul.f32 %v1101_v36, %v1101_v36  ;;  %v433_v42 = vmul.f32 %v432_v16, %v1121_v53 }
  0xa6   : > { %v631_v43 = vmul.f32 2.1237322e-06, %v1103_v37  ;;  %v1115_v44 = vmin.f32 %v469_v38, 16.0  ;;  %v394_v23 = vadd.f32 0.0036580483, %v393_v5 }
  0xa7   : > { %v671_v45 = vmul.f32 2.1237322e-06, %v1109_v40  ;;  %v1118_v47 = vmin.f32 %v509_v41, 16.0  ;;  %v338_v48 = vpop.f32.mrf.mxu0 }
  0xa8   : > { %v632_v49 = vadd.f32 0.00028619796, %v631_v43  ;;  %v471_v50 = vmul.f32 2.1237322e-06, %v1115_v44  ;;  %v339_v51 = vadd.f32 %v338_v48, %v286_v46  ;;  %v367_v52 = vpop.f32.mrf.mxu1  ;;  %v1155_v43 = vmul.f32 0.5, %v1074_v22 }
  0xa9   : > { %v672_v54 = vadd.f32 0.00028619796, %v671_v45  ;;  %v511_v55 = vmul.f32 2.1237322e-06, %v1118_v47  ;;  %v1125_v59 = vadd.f32 %v367_v52, %v286_v46  ;;  %v395_v48 = vmul.f32 %v394_v23, %v1091_v32 }
  0xaa   : > { %v633_v57 = vmul.f32 %v632_v49, %v1103_v37  ;;  %v472_v58 = vadd.f32 0.00028619796, %v471_v50  ;;  %v1128_v62 = vmul.f32 0.70710677, %v339_v51  ;;  %v1160_v49 = vmul.f32 0.5, %v1076_v24 }
  0xab   : > { %v673_v60 = vmul.f32 %v672_v54, %v1109_v40  ;;  %v512_v61 = vadd.f32 0.00028619796, %v511_v55  ;;  %v1138_v8 = vmul.f32 0.70710677, %v1125_v59  ;;  %v642_v52 = vmul.f32 3.8918573e-05, %v1103_v37 }
  0xac   : > { %v634_v63 = vadd.f32 0.0036580483, %v633_v57  ;;  %v473_v0 = vmul.f32 %v472_v58, %v1115_v44  ;;  %v549_v4 = vmul.f32 %v1128_v62, %v1128_v62  ;;  %v682_v57 = vmul.f32 3.8918573e-05, %v1109_v40 }
  0xad   : > { %v674_v2 = vadd.f32 0.0036580483, %v673_v60  ;;  %v513_v3 = vmul.f32 %v512_v61, %v1118_v47  ;;  %v589_v14 = vmul.f32 %v1138_v8, %v1138_v8  ;;  %v643_v60 = vadd.f32 0.001143296, %v642_v52 }
  0xae   : > { %v635_v6 = vmul.f32 %v634_v63, %v1103_v37  ;;  %v474_v7 = vadd.f32 0.0036580483, %v473_v0  ;;  %v1141_v11 = vmin.f32 %v549_v4, 16.0  ;;  %v1168_v61 = vmul.f32 3.8918573e-05, %v1091_v32 }
  0xaf   : > { %v675_v9 = vmul.f32 %v674_v2, %v1109_v40  ;;  %v514_v10 = vadd.f32 0.0036580483, %v513_v3  ;;  %v1149_v28 = vmin.f32 %v589_v14, 16.0  ;;  %v1170_v63 = vadd.f32 0.0036580483, %v433_v42 }
  0xb0   : > { %v636_v12 = vadd.f32 0.05243302, %v635_v6  ;;  %v475_v13 = vmul.f32 %v474_v7, %v1115_v44  ;;  %v551_v21 = vmul.f32 2.1237322e-06, %v1141_v11  ;;  %v683_v1 = vadd.f32 0.001143296, %v682_v57 }
  0xb1   : > { %v676_v18 = vadd.f32 0.05243302, %v675_v9  ;;  %v515_v20 = vmul.f32 %v514_v10, %v1118_v47  ;;  %v591_v41 = vmul.f32 2.1237322e-06, %v1149_v28  ;;  %v1174_v2 = vadd.f32 0.05243302, %v395_v48 }
  0xb2   : > { %v637_v25 = vmul.f32 %v636_v12, %v1103_v37  ;;  %v476_v35 = vadd.f32 0.05243302, %v475_v13  ;;  %v552_v38 = vadd.f32 0.00028619796, %v551_v21  ;;  %v1176_v3 = vmul.f32 0.5, %v339_v51 }
  0xb3   : > { %v677_v33 = vmul.f32 %v676_v18, %v1109_v40  ;;  %v516_v39 = vadd.f32 0.05243302, %v515_v20  ;;  %v592_v50 = vadd.f32 0.00028619796, %v591_v41  ;;  %v644_v5 = vmul.f32 %v643_v60, %v1103_v37 }
  0xb4   : > { %v638_v45 = vadd.f32 0.18741608, %v637_v25  ;;  %v553_v46 = vmul.f32 %v552_v38, %v1141_v11  ;;  %v477_v55 = vmul.f32 %v476_v35, %v1115_v44  ;;  %v684_v10 = vmul.f32 %v683_v1, %v1109_v40 }
  0xb5   : > { %v678_v54 = vadd.f32 0.18741608, %v677_v33  ;;  %v517_v22 = vmul.f32 %v516_v39, %v1118_v47  ;;  %v593_v58 = vmul.f32 %v592_v50, %v1149_v28  ;;  %v645_v14 = vadd.f32 0.014752088, %v644_v5 }
  0xb6   : > { %v554_v56 = vadd.f32 0.0036580483, %v553_v46  ;;  %v639_v24 = vmul.f32 %v638_v45, %v1103_v37  ;;  %v478_v7 = vadd.f32 0.18741608, %v477_v55  ;;  %v562_v16 = vmul.f32 3.8918573e-05, %v1141_v11 }
  0xb7   : > { %v594_v4 = vadd.f32 0.0036580483, %v593_v58  ;;  %v679_v6 = vmul.f32 %v678_v54, %v1109_v40  ;;  %v518_v12 = vadd.f32 0.18741608, %v517_v22  ;;  %v685_v51 = vadd.f32 0.014752088, %v684_v10 }
  0xb8   : > { %v555_v0 = vmul.f32 %v554_v56, %v1141_v11  ;;  %v640_v18 = vadd.f32 1.1283791, %v639_v24  ;;  %v602_v21 = vmul.f32 3.8918573e-05, %v1149_v28  ;;  %v646_v25 = vmul.f32 %v645_v14, %v1103_v37 }
  0xb9   : > { %v595_v13 = vmul.f32 %v594_v4, %v1149_v28  ;;  %v563_v33 = vadd.f32 0.001143296, %v562_v16  ;;  %v482_v35 = vmul.f32 3.8918573e-05, %v1115_v44  ;;  %v686_v39 = vmul.f32 %v685_v51, %v1109_v40 }
  0xba   : > { %v556_v9 = vadd.f32 0.05243302, %v555_v0  ;;  %v603_v41 = vadd.f32 0.001143296, %v602_v21  ;;  %v522_v42 = vmul.f32 3.8918573e-05, %v1118_v47  ;;  %v479_v52 = vmul.f32 %v478_v7, %v1115_v44 }
  0xbb   : > { %v596_v23 = vadd.f32 0.05243302, %v595_v13  ;;  %v647_v46 = vadd.f32 0.112945676, %v646_v25  ;;  %v564_v48 = vmul.f32 %v563_v33, %v1141_v11  ;;  %v483_v50 = vadd.f32 0.001143296, %v482_v35 }
  0xbc   : > { %v557_v20 = vmul.f32 %v556_v9, %v1141_v11  ;;  %v687_v54 = vadd.f32 0.112945676, %v686_v39  ;;  %v604_v55 = vmul.f32 %v603_v41, %v1149_v28  ;;  %v523_v56 = vadd.f32 0.001143296, %v522_v42 }
  0xbd   : > { %v597_v45 = vmul.f32 %v596_v23, %v1149_v28  ;;  %v648_v22 = vmul.f32 %v647_v46, %v1103_v37  ;;  %v565_v58 = vadd.f32 0.014752088, %v564_v48  ;;  %v484_v60 = vmul.f32 %v483_v50, %v1115_v44 }
  0xbe   : > { %v558_v38 = vadd.f32 0.18741608, %v557_v20  ;;  %v519_v24 = vmul.f32 %v518_v12, %v1118_v47  ;;  %v688_v0 = vmul.f32 %v687_v54, %v1109_v40  ;;  %v605_v1 = vadd.f32 0.014752088, %v604_v55 }
  0xbf   : > { %v598_v57 = vadd.f32 0.18741608, %v597_v45  ;;  %v524_v4 = vmul.f32 %v523_v56, %v1118_v47  ;;  %v649_v7 = vadd.f32 0.4994258, %v648_v22  ;;  %v566_v9 = vmul.f32 %v565_v58, %v1141_v11 }
  0xc0   : > { %v559_v5 = vmul.f32 %v558_v38, %v1141_v11  ;;  %v485_v10 = vadd.f32 0.014752088, %v484_v60  ;;  %v680_v13 = vadd.f32 1.1283791, %v679_v6  ;;  %v689_v14 = vadd.f32 0.4994258, %v688_v0 }
  0xc1   : > { %v606_v16 = vmul.f32 %v605_v1, %v1149_v28  ;;  %v525_v20 = vadd.f32 0.014752088, %v524_v4  ;;  %v599_v51 = vmul.f32 %v598_v57, %v1149_v28  ;;  %v650_v12 = vmul.f32 %v649_v7, %v1103_v37 }
  0xc2   : > { %v567_v21 = vadd.f32 0.112945676, %v566_v9  ;;  %v486_v23 = vmul.f32 %v485_v10, %v1115_v44  ;;  %v480_v25 = vadd.f32 1.1283791, %v479_v52  ;;  %v690_v33 = vmul.f32 %v689_v14, %v1109_v40 }
  0xc3   : > { %v607_v35 = vadd.f32 0.112945676, %v606_v16  ;;  %v526_v38 = vmul.f32 %v525_v20, %v1118_v47  ;;  %v520_v39 = vadd.f32 1.1283791, %v519_v24  ;;  %v560_v41 = vadd.f32 1.1283791, %v559_v5 }
  0xc4   : > { %v1206_v6 = vadd.f32 1.0, %v650_v12  ;;  %v568_v42 = vmul.f32 %v567_v21, %v1141_v11  ;;  %v1209_v45 = vadd.f32 1.0, %v690_v33  ;;  %v487_v37 = vadd.f32 0.112945676, %v486_v23 }
  0xc5   : > { %v608_v46 = vmul.f32 %v607_v35, %v1149_v28  ;;  %v527_v48 = vadd.f32 0.112945676, %v526_v38  ;;  %v1213_v50 = vmul.f32 %v640_v18, %v1079_v26  ;;  %v1216_v40 = vmul.f32 0.5, %v1125_v59 }
  0xc6   : > { %v600_v52 = vadd.f32 1.1283791, %v599_v51  ;;  %932 = vrcp.f32 %v1206_v6  ;;  %v1220_v54 = vmul.f32 %v680_v13, %v1087_v30  ;;  %v1223_v55 = vmul.f32 %v480_v25, %v1096_v34 }
  0xc7   : > { %934 = vrcp.f32 %v1209_v45  ;;  %v403_v56 = vadd.f32 0.001143296, %v1168_v61  ;;  %v1228_v57 = vmul.f32 %v520_v39, %v1101_v36  ;;  %v1231_v26 = vmul.f32 %v560_v41, %v1128_v62 }
  0xc8   : > { %v569_v59 = vadd.f32 0.4994258, %v568_v42  ;;  %v609_v18 = vadd.f32 0.4994258, %v608_v46  ;;  %v661_v22 = vand.u32 2147483647, %v1206_v6  ;;  %v488_v58 = vmul.f32 %v487_v37, %v1115_v44 }
  0xc9   : > { %v663_v30 = vand.u32 2147483648, %v1206_v6  ;;  %v528_v34 = vmul.f32 %v527_v48, %v1118_v47  ;;  %v1238_v60 = vmul.f32 %v600_v52, %v1138_v8  ;;  %v701_v61 = vand.u32 2147483647, %v1209_v45 }
  0xca   : > { %v570_v36 = vmul.f32 %v569_v59, %v1141_v11  ;;  %v610_v62 = vmul.f32 %v609_v18, %v1149_v28  ;;  %vm657_vm2 = vweird.f32 %v1206_v6  ;;  %v489_v24 = vadd.f32 0.4994258, %v488_v58 }
  0xcb   : > { %v529_v0 = vadd.f32 0.4994258, %v528_v34  ;;  %v404_v1 = vmul.f32 %v403_v56, %v1091_v32  ;;  %vm697_vm3 = vweird.f32 %v1209_v45  ;;  %v703_v5 = vand.u32 2147483648, %v1209_v45 }
  0xcc   : > { %v933_v4 = vpop.eup %932  ;;  %v1247_v7 = vadd.f32 1.0, %v570_v36  ;;  %v1249_v8 = vadd.f32 1.0, %v610_v62  ;;  %vm1252_vm4 = vcmp.eq.f32.partialorder %v661_v22, 8.507059e+37  ;;  %v664_v10 = vor.u32 1.1754944e-38, %v663_v30 }
  0xcd   : > { %v935_v9 = vpop.eup %934  ;;  %v653_v11 = vmul.f32 %v933_v4, %v1206_v6  ;;  %v490_v13 = vmul.f32 %v489_v24, %v1115_v44  ;;  %vm1258_vm5 = vcmp.eq.f32.partialorder %v701_v61, 8.507059e+37  ;;  %v530_v20 = vmul.f32 %v529_v0, %v1118_v47 }
  0xce   : > { %v693_v14 = vmul.f32 %v935_v9, %v1209_v45  ;;  %936 = vrcp.f32 %v1247_v7  ;;  %v405_v12 = vadd.f32 0.014752088, %v404_v1  ;;  %v442_v21 = vmul.f32 3.8918573e-05, %v1121_v53 }
  0xcf   : > { %v654_v51 = vsub.f32 1.0, %v653_v11  ;;  %938 = vrcp.f32 %v1249_v8  ;;  %vm658_vm6 = vweird.f32 %v933_v4  ;;  %v704_v25 = vor.u32 1.1754944e-38, %v703_v5 }
  0xd0   : > { %v694_v23 = vsub.f32 1.0, %v693_v14  ;;  %v581_v44 = vand.u32 2147483647, %v1247_v7  ;;  %v583_v35 = vand.u32 2147483648, %v1247_v7  ;;  %v623_v38 = vand.u32 2147483648, %v1249_v8  ;;  %vm659_vm8 = vmor %vm657_vm2, %vm658_vm6 }
  0xd1   : > { %v655_v33 = vmul.f32 %v933_v4, %v654_v51  ;;  %v1269_v39 = vadd.f32 1.0, %v490_v13  ;;  %vm698_vm7 = vweird.f32 %v935_v9  ;;  %v621_v47 = vand.u32 2147483647, %v1249_v8 }
  0xd2   : > { %v695_v41 = vmul.f32 %v935_v9, %v694_v23  ;;  %v1272_v42 = vadd.f32 1.0, %v530_v20  ;;  %v406_v37 = vmul.f32 %v405_v12, %v1091_v32  ;;  %v443_v48 = vadd.f32 0.001143296, %v442_v21  ;;  %vm699_vm11 = vmor %vm697_vm3, %vm698_vm7 }
  0xd3   : > { %v656_v46 = vadd.f32 %v933_v4, %v655_v33  ;;  %940 = vrcp.f32 %v1269_v39  ;;  %vm577_vm9 = vweird.f32 %v1247_v7  ;;  %vm617_vm10 = vweird.f32 %v1249_v8 }
  0xd4   : > { %v937_v52 = vpop.eup %936  ;;  %v696_v56 = vadd.f32 %v935_v9, %v695_v41  ;;  %942 = vrcp.f32 %v1272_v42  ;;  %vm1286_vm12 = vcmp.eq.f32.partialorder %v581_v44, 8.507059e+37  ;;  %v584_v6 = vor.u32 1.1754944e-38, %v583_v35 }
  0xd5   : > { %v939_v59 = vpop.eup %938  ;;  %v660_v18 = vsel %vm659_vm8, %v933_v4, %v656_v46  ;;  %v573_v22 = vmul.f32 %v937_v52, %v1247_v7  ;;  %v624_v58 = vor.u32 1.1754944e-38, %v623_v38  ;;  %vm1293_vm13 = vcmp.eq.f32.partialorder %v621_v47, 8.507059e+37 }
  0xd6   : > { %v665_v34 = vsel %vm1252_vm4, %v664_v10, %v660_v18  ;;  %v700_v61 = vsel %vm699_vm11, %v935_v9, %v696_v56  ;;  %v613_v36 = vmul.f32 %v939_v59, %v1249_v8  ;;  %v501_v45 = vand.u32 2147483647, %v1269_v39 }
  0xd7   : > { %v666_v24 = vmul.f32 %v665_v34, %v1213_v50  ;;  %v705_v0 = vsel %vm1258_vm5, %v704_v25, %v700_v61  ;;  %v574_v1 = vsub.f32 1.0, %v573_v22  ;;  %v503_v4 = vand.u32 2147483648, %v1269_v39 }
  0xd8   : > { %v706_v5 = vmul.f32 %v705_v0, %v1220_v54  ;;  %vm578_vm14 = vweird.f32 %v937_v52  ;;  %v614_v9 = vsub.f32 1.0, %v613_v36  ;;  %vm618_vm15 = vweird.f32 %v939_v59 }
  0xd9   : > { %vm497_vm1 = vweird.f32 %v1269_v39  ;;  %v941_v11 = vpop.eup %940  ;;  %v894_v28 = vclamps-f32 %v666_v24, 1.0  ;;  %v575_v10 = vmul.f32 %v937_v52, %v574_v1  ;;  %vm537_vm2 = vweird.f32 %v1272_v42  ;;  %vm579_vm4 = vmor %vm577_vm9, %vm578_vm14 }
  0xda   : > { %v541_v50 = vand.u32 2147483647, %v1272_v42  ;;  %v543_v13 = vand.u32 2147483648, %v1272_v42  ;;  %v943_v14 = vpop.eup %942  ;;  %v895_v16 = vclamps-f32 %v706_v5, 1.0  ;;  %v615_v20 = vmul.f32 %v939_v59, %v614_v9  ;;  %vm619_vm6 = vmor %vm617_vm10, %vm618_vm15 }
  0xdb   : > { %v493_v51 = vmul.f32 %v941_v11, %v1269_v39  ;;  %vm1308_vm3 = vcmp.eq.f32.partialorder %v501_v45, 8.507059e+37  ;;  %v407_v12 = vadd.f32 0.112945676, %v406_v37  ;;  %v715_v21 = vadd.f32 1.0, %v894_v28 }
  0xdc   : > { %v576_v23 = vadd.f32 %v937_v52, %v575_v10  ;;  %v533_v25 = vmul.f32 %v943_v14, %v1272_v42  ;;  %v444_v44 = vmul.f32 %v443_v48, %v1121_v53  ;;  %v716_v33 = vadd.f32 1.0, %v895_v16 }
  0xdd   : > { %v616_v35 = vadd.f32 %v939_v59, %v615_v20  ;;  %v494_v38 = vsub.f32 1.0, %v493_v51  ;;  %vm498_vm5 = vweird.f32 %v941_v11  ;;  %v723_v41 = vmul.f32 %v715_v21, %v1155_v43 }
  0xde   : > { %v580_v47 = vsel %vm579_vm4, %v937_v52, %v576_v23  ;;  %v534_v46 = vsub.f32 1.0, %v533_v25  ;;  %vm538_vm7 = vweird.f32 %v943_v14  ;;  %v724_v37 = vmul.f32 %v716_v33, %v1160_v49  ;;  %vm499_vm8 = vmor %vm497_vm1, %vm498_vm5 }
  0xdf   : > { %v585_v48 = vsel %vm1286_vm12, %v584_v6, %v580_v47  ;;  %v620_v56 = vsel %vm619_vm6, %v939_v59, %v616_v35  ;;  %v495_v7 = vmul.f32 %v941_v11, %v494_v38  ;;  %748 = vmatpush.msrb.mxu2 %v723_v41  ;;  %v408_v22 = vmul.f32 %v407_v12, %v1091_v32  ;;  %vm539_vm10 = vmor %vm537_vm2, %vm538_vm7 }
  0xe0   : > { %v586_v18 = vmul.f32 %v585_v48, %v1231_v26  ;;  %v625_v43 = vsel %vm1293_vm13, %v624_v58, %v620_v56  ;;  %v535_v52 = vmul.f32 %v943_v14, %v534_v46  ;;  %768 = vmatpush.msrb.mxu3 %v724_v37  ;;  %v504_v61 = vor.u32 1.1754944e-38, %v503_v4 }
  0xe1   : > { %v626_v8 = vmul.f32 %v625_v43, %v1238_v60  ;;  %v496_v34 = vadd.f32 %v941_v11, %v495_v7  ;;  %v445_v49 = vadd.f32 0.014752088, %v444_v44  ;;  %vm542_vm9 = vcmp.eq.f32.partialorder %v541_v50, 8.507059e+37 }
  0xe2   : > { %v892_v36 = vclamps-f32 %v586_v18, 1.0  ;;  %v536_v59 = vadd.f32 %v943_v14, %v535_v52  ;;  %v409_v26 = vadd.f32 0.4994258, %v408_v22  ;;  %v544_v58 = vor.u32 1.1754944e-38, %v543_v13 }
  0xe3   : > { %v893_v30 = vclamps-f32 %v626_v8, 1.0  ;;  %v500_v6 = vsel %vm499_vm8, %v941_v11, %v496_v34  ;;  %v446_v60 = vmul.f32 %v445_v49, %v1121_v53  ;;  %v435_v9 = vmul.f32 %v1170_v63, %v1121_v53 }
  0xe4   : > { %v713_v62 = vadd.f32 1.0, %v892_v36  ;;  %v505_v45 = vsel %vm1308_vm3, %v504_v61, %v500_v6  ;;  %v540_v24 = vsel %vm539_vm10, %v943_v14, %v536_v59  ;;  %v410_v39 = vmul.f32 %v409_v26, %v1091_v32 }
  0xe5   : > { %v714_v0 = vadd.f32 1.0, %v893_v30  ;;  %v506_v1 = vmul.f32 %v505_v45, %v1223_v55  ;;  %v545_v4 = vsel %vm542_vm9, %v544_v58, %v540_v24  ;;  %v447_v5 = vadd.f32 0.112945676, %v446_v60  ;;  %v725_v45 = vld [vmem:[%s1382_s3] sm:$0xf] }
  0xe6   : > { %v721_v42 = vmul.f32 %v713_v62, %v1176_v3  ;;  %v546_v11 = vmul.f32 %v545_v4, %v1228_v57  ;;  %v411_v28 = vadd.f32 1.0, %v410_v39  ;;  %v397_v10 = vmul.f32 %v1174_v2, %v1091_v32  ;;  %v726_v2 = vld [vmem:[%s1383_s4] sm:$0xf] }
  0xe7   : > { %v722_v50 = vmul.f32 %v714_v0, %v1216_v40  ;;  %v890_v13 = vclamps-f32 %v506_v1, 1.0  ;;  %v448_v14 = vmul.f32 %v447_v5, %v1121_v53  ;;  %v375_v16 = vmul.f32 0.5, %v1081_v27  ;;  %729 = vperm.xlu2 %931, %v726_v2  }
  0xe8   : > { %749 = vmatpush.msrb.mxu2 %v721_v42  ;;  %v891_v55 = vclamps-f32 %v546_v11, 1.0  ;;  %944 = vrcp.f32 %v411_v28  ;;  %v436_v3 = vadd.f32 0.05243302, %v435_v9  ;;  %v376_v57 = vmul.f32 0.5, %v1089_v31 }
  0xe9   : > { %769 = vmatpush.msrb.mxu3 %v722_v50  ;;  %v711_v63 = vadd.f32 1.0, %v890_v13  ;;  %v449_v20 = vadd.f32 0.4994258, %v448_v14  ;;  %v398_v40 = vadd.f32 0.18741608, %v397_v10  ;;  %v423_v38 = vand.u32 2147483648, %v411_v28 }
  0xea   : > { %v712_v51 = vadd.f32 1.0, %v891_v55  ;;  %v437_v25 = vmul.f32 %v436_v3, %v1121_v53  ;;  %v421_v46 = vand.u32 2147483647, %v411_v28  ;;  %vm417_vm12 = vweird.f32 %v411_v28 }
  0xeb   : > { %v719_v54 = vmul.f32 %v711_v63, %v375_v16  ;;  %v450_v12 = vmul.f32 %v449_v20, %v1121_v53  ;;  %v399_v44 = vmul.f32 %v398_v40, %v1091_v32  ;;  %v424_v7 = vor.u32 1.1754944e-38, %v423_v38 }
  0xec   : > { %v720_v21 = vmul.f32 %v712_v51, %v376_v57  ;;  %v438_v35 = vadd.f32 0.18741608, %v437_v25  ;;  %vm422_vm14 = vcmp.eq.f32.partialorder %v421_v46, 8.507059e+37  ;;  %vm732_vm4 = vcmask 261120  }
  0xed   : > { %750 = vmatpush.msrb.mxu2 %v719_v54  ;;  %v451_v23 = vadd.f32 1.0, %v450_v12  ;;  %v400_v41 = vadd.f32 1.1283791, %v399_v44 }
  0xee   : > { %v945_v27 = vpop.eup %944  ;;  %770 = vmatpush.msrb.mxu3 %v720_v21  ;;  %v439_v56 = vmul.f32 %v438_v35, %v1121_v53  ;;  %v373_v53 = vmul.f32 0.5, %v1065_v15  ;;  %v374_v15 = vmul.f32 0.5, %v1070_v19 }
  0xef   : > { %v413_v31 = vmul.f32 %v945_v27, %v411_v28  ;;  %946 = vrcp.f32 %v451_v23  ;;  %vm418_vm11 = vweird.f32 %v945_v27  ;;  %v401_v43 = vmul.f32 %v400_v41, %v1068_v17 }
  0xf0   : > { %vm419_vm13 = vmor %vm417_vm12, %vm418_vm11  ;;  %v463_v34 = vand.u32 2147483648, %v451_v23  ;;  %v440_v61 = vadd.f32 1.1283791, %v439_v56  ;;  %v461_v36 = vand.u32 2147483647, %v451_v23  ;;  %vm457_vm1 = vweird.f32 %v451_v23 }
  0xf1   : > { %v414_v33 = vsub.f32 1.0, %v413_v31 }
  0xf2   : > { %v464_v6 = vor.u32 1.1754944e-38, %v463_v34  ;;  %v441_v17 = vmul.f32 %v440_v61, %v1084_v29  ;;  %vm462_vm3 = vcmp.eq.f32.partialorder %v461_v36, 8.507059e+37 }
  0xf3   : > { %v415_v47 = vmul.f32 %v945_v27, %v414_v33 }
  0xf5   : > { %v947_v37 = vpop.eup %946  ;;  %v416_v48 = vadd.f32 %v945_v27, %v415_v47 }
  0xf6   : > { %v453_v18 = vmul.f32 %v947_v37, %v451_v23  ;;  %vm458_vm15 = vweird.f32 %v947_v37 }
  0xf7   : > { %v420_v32 = vsel %vm419_vm13, %v945_v27, %v416_v48  ;;  %vm459_vm2 = vmor %vm457_vm1, %vm458_vm15 }
  0xf8   : > { %v425_v52 = vsel %vm422_vm14, %v424_v7, %v420_v32  ;;  %v454_v22 = vsub.f32 1.0, %v453_v18 }
  0xf9   : > { %v426_v8 = vmul.f32 %v425_v52, %v401_v43 }
  0xfa   : > { %v455_v49 = vmul.f32 %v947_v37, %v454_v22 }
  0xfb   : > { %v888_v59 = vclamps-f32 %v426_v8, 1.0 }
  0xfc   : > { %v456_v26 = vadd.f32 %v947_v37, %v455_v49 }
  0xfd   : > { %v709_v30 = vadd.f32 1.0, %v888_v59 }
  0xfe   : > { %v460_v58 = vsel %vm459_vm2, %v947_v37, %v456_v26 }
  0xff   : > { %v717_v60 = vmul.f32 %v709_v30, %v373_v53  ;;  %v465_v62 = vsel %vm462_vm3, %v464_v6, %v460_v58 }
 0x100   : > { %v466_v24 = vmul.f32 %v465_v62, %v441_v17 }
 0x101   : > { %751 = vmatpush.msrb.mxu2 %v717_v60 }
 0x102   : > { %v889_v39 = vclamps-f32 %v466_v24, 1.0  ;;  %896 = vmatmul.msk.f32.vlgmr.msrb.gmra.mxu2 %vm732_vm4, %v725_v45 }
 0x104   : > { %v710_v0 = vadd.f32 1.0, %v889_v39 }
 0x106   : > { %v718_v1 = vmul.f32 %v710_v0, %v374_v15 }
 0x108   : > { %771 = vmatpush.msrb.mxu3 %v718_v1 }
 0x109   : > { %897 = vmatmul.msk.f32.vlgmr.msrb.gmra.mxu3 %vm732_vm4, %v725_v45 }
 0x141   : > { %v730_v29 = vpop.permute.xlu2 %729 }
 0x185   : > { %v753_v5 = vpop.f32.mrf.mxu2 }
 0x186   : > { %v754_v11 = vadd.f32 %v753_v5, %v730_v29 }
 0x18c   : > { %v773_v4 = vpop.f32.mrf.mxu3 }
 0x18d   : > { %v774_v9 = vadd.f32 %v773_v4, %v730_v29 }
 0x18f   : > { %v778_v42 = vrot.slane %v774_v9, 4 }
 0x191   : > { %v779_v28 = vsel %vm310_vm0, %v754_v11, %v778_v42 }
 0x192   : > { %781 = vst [vmem:[%s262_s28] sm:$0xff] %v779_v28 }
 0x193 PF: > { %s15_s20 = sadd.s32 1, %s970_s20   ;;  %s1395_s18 = smov %s966_s19 }
 0x194   : > { %p12_p5 = scmp.ge.s32.totalorder %s15_s20, 4   ;;  %s1396_s19 = smov %s1398_s21 }
 0x196   :  { %14 = sbr.rel (!%p12_p5) target bundleno = 2 (0x2), region = 70 }

</bundles_post_ra>
